<compile_context>
chip_gen: v7x
topology: tpu7x:2x2x1
jax: 0.10.0
libtpu: 0.0.40
codegen_flags: <defaults>
</compile_context>

<pallas_src>
import jax
import jax.numpy as jnp
from jax.experimental import pallas as pl
from jax.experimental.pallas import tpu as pltpu


# ---------------------------------------------------------------------------
# Tile sizing: largest lane tile (multiple of 128, dividing the lane extent)
# such that n_streams double-buffered f32 blocks fit a conservative VMEM budget.
# ---------------------------------------------------------------------------
def _pick_lane_tile(lane_extent, sublane_extent, n_streams,
                    budget_bytes=8 * 1024 * 1024, max_tile=8192):
    cap = budget_bytes // (n_streams * 2 * 4 * max(1, sublane_extent))
    cap = max(128, min(cap, max_tile))
    if lane_extent <= cap:
        return lane_extent                      # whole lane axis fits
    t = (min(cap, lane_extent) // 128) * 128
    while t >= 128:
        if lane_extent % t == 0:
            return t
        t -= 128
    return lane_extent                          # no clean divisor: fall back to full


# ---------------------------------------------------------------------------
# Pallas kernels
# ---------------------------------------------------------------------------
def _wiener_filter_kernel(hr_ref, hi_ref, reg_ref, lam_ref, fr_ref, fi_ref):
    """One-shot, batch-invariant filter: fr + i*fi = conj(H) / denom.

    hr/hi : (1, S, T)   real/imag of fft2(psf_padded) tile
    reg   : (S, T)      |fft2(fftshift(reg_padded))|^2 tile (no C broadcast)
    lam   : (S, 1)      lambda per stack slice
    """
    hr = hr_ref[...]
    hi = hi_ref[...]
    lam = lam_ref[...]
    denom = hr * hr + hi * hi + (lam * lam) * reg_ref[...] + 1e-6
    inv = pl.reciprocal(denom, approx=False)     # exact: keeps 1e-4/1e-5 tolerance
    fr_ref[...] = hr * inv
    fi_ref[...] = hi * inv


def _wiener_apply_kernel(mr_ref, mi_ref, fr_ref, fi_ref, rr_ref, ri_ref):
    """Per-batch hot path: (mr + i*mi) * (fr - i*fi), purely elementwise.

    mr/mi : (1, CS, T) tile of fft2(meas); fr/fi : (CS, T) resident filter tile.
    """
    mr = mr_ref[...]
    mi = mi_ref[...]
    fr = fr_ref[...]
    fi = fi_ref[...]
    rr_ref[...] = mr * fr + mi * fi
    ri_ref[...] = mi * fr - mr * fi


def _max_kernel(x_ref, m_ref):
    """Running max over lane tiles of one (b,c) row. x: (1, S, T), m: (1, 1, 1)."""
    @pl.when(pl.program_id(1) == 0)
    def _():
        m_ref[...] = jnp.full(m_ref.shape, -jnp.inf, dtype=m_ref.dtype)
    m_ref[...] = jnp.maximum(m_ref[...], jnp.max(x_ref[...]))


def _divide_kernel(x_ref, m_ref, o_ref):
    """Divide a (1, S, T) tile by its per-(b,c) max via reciprocal multiply."""
    inv = pl.reciprocal(m_ref[...], approx=False)   # (1,1,1) broadcasts
    o_ref[...] = x_ref[...] * inv


# ---------------------------------------------------------------------------
# pallas_call wrappers
# ---------------------------------------------------------------------------
def wiener_filter_precompute(hr, hi, reg2, lam):
    C, S, HW = hr.shape
    t = _pick_lane_tile(HW, S, n_streams=5)
    nt = HW // t
    spec_h = pl.BlockSpec((1, S, t), lambda c, i: (c, 0, i))
    spec_reg = pl.BlockSpec((S, t), lambda c, i: (0, i))
    spec_lam = pl.BlockSpec((S, 1), lambda c, i: (0, 0))
    out_shape = jax.ShapeDtypeStruct((C, S, HW), jnp.float32)
    return pl.pallas_call(
        _wiener_filter_kernel,
        grid=(C, nt),
        in_specs=[spec_h, spec_h, spec_reg, spec_lam],
        out_specs=(spec_h, spec_h),
        out_shape=(out_shape, out_shape),
        compiler_params=pltpu.CompilerParams(
            dimension_semantics=("parallel", "parallel")),
    )(hr, hi, reg2, lam)


def wiener_apply(mr, mi, fr, fi):
    B, CS, HW = mr.shape
    t = _pick_lane_tile(HW, CS, n_streams=6)
    nt = HW // t
    spec_m = pl.BlockSpec((1, CS, t), lambda i, b: (b, 0, i))
    # Filter index_map depends only on the tile axis -> block stays resident
    # across the innermost batch loop (no re-DMA per batch).
    spec_f = pl.BlockSpec((CS, t), lambda i, b: (0, i))
    out_shape = jax.ShapeDtypeStruct((B, CS, HW), jnp.float32)
    return pl.pallas_call(
        _wiener_apply_kernel,
        grid=(nt, B),                       # B innermost
        in_specs=[spec_m, spec_m, spec_f, spec_f],
        out_specs=(spec_m, spec_m),
        out_shape=(out_shape, out_shape),
        compiler_params=pltpu.CompilerParams(
            dimension_semantics=("parallel", "arbitrary")),
    )(mr, mi, fr, fi)


def normalize(x):
    """Per-(b,c) max over (S, H*W) and divide. x: (BC, S, HW), lane-dense."""
    BC, S, HW = x.shape

    # Pass 1: tiled running-max reduction (reduction axis last, "arbitrary").
    t_max = _pick_lane_tile(HW, S, n_streams=2)
    spec_x = pl.BlockSpec((1, S, t_max), lambda i, j: (i, 0, j))
    spec_m = pl.BlockSpec((1, 1, 1), lambda i, j: (i, 0, 0))
    maxes = pl.pallas_call(
        _max_kernel,
        grid=(BC, HW // t_max),
        in_specs=[spec_x],
        out_specs=spec_m,
        out_shape=jax.ShapeDtypeStruct((BC, 1, 1), jnp.float32),
        compiler_params=pltpu.CompilerParams(
            dimension_semantics=("parallel", "arbitrary")),
    )(x)

    # Pass 2: tiled reciprocal-multiply.
    t_div = _pick_lane_tile(HW, S, n_streams=3)
    spec_xd = pl.BlockSpec((1, S, t_div), lambda i, j: (i, 0, j))
    spec_md = pl.BlockSpec((1, 1, 1), lambda i, j: (i, 0, 0))
    return pl.pallas_call(
        _divide_kernel,
        grid=(BC, HW // t_div),
        in_specs=[spec_xd, spec_md],
        out_specs=spec_xd,
        out_shape=jax.ShapeDtypeStruct((BC, S, HW), x.dtype),
        compiler_params=pltpu.CompilerParams(
            dimension_semantics=("parallel", "parallel")),
    )(x, maxes)


# ---------------------------------------------------------------------------
# Forward pass (FFT glue in plain JAX, element-wise hot paths in Pallas)
# ---------------------------------------------------------------------------
def wiener_net_forward(meas, psf, reg_filter, lambd):
    # meas: [B, C, S, H, W]; psf: [1, C, S, ph, pw]; reg_filter: [1,1,S,3,3]; lambd: [1,1,S,1,1]
    B, C, S, H, W = meas.shape
    ph, pw = psf.shape[-2:]
    pad_h = (H - ph) // 2
    pad_w = (W - pw) // 2
    if pw % 2 == 1:
        psf_padded = jnp.pad(
            psf, ((0, 0), (0, 0), (0, 0), (pad_h + 1, pad_h), (pad_w + 1, pad_w)))
    else:
        psf_padded = jnp.pad(
            psf, ((0, 0), (0, 0), (0, 0), (pad_h, pad_h), (pad_w, pad_w)))

    Hpad, Wpad = psf_padded.shape[-2:]
    left = (Hpad - 3) // 2
    top = (Wpad - 3) // 2
    reg_padded = jnp.pad(
        reg_filter, ((0, 0), (0, 0), (0, 0), (left + 1, left), (top + 1, top)))

    # TODO(synk): fft2 / ifft2 / fftshift / ifftshift have no Pallas TPU primitive; kept in XLA.
    regfft = jnp.fft.fft2(jnp.fft.fftshift(reg_padded, axes=(-2, -1)))   # [1,1,S,H,W]
    Hr = jnp.fft.fft2(psf_padded[0])                                     # [C,S,H,W]
    measfft = jnp.fft.fft2(meas)                                         # [B,C,S,H,W]

    HW = H * W
    CS = C * S
    hr = jnp.real(Hr).astype(jnp.float32).reshape(C, S, HW)
    hi = jnp.imag(Hr).astype(jnp.float32).reshape(C, S, HW)
    reg2 = (jnp.abs(regfft[0, 0]) ** 2).astype(jnp.float32).reshape(S, HW)   # no C broadcast
    lam = lambd[0, 0, :, 0, 0].astype(jnp.float32).reshape(S, 1)

    # Batch-invariant filter planes, computed once.
    fr, fi = wiener_filter_precompute(hr, hi, reg2, lam)
    fr = fr.reshape(CS, HW)
    fi = fi.reshape(CS, HW)

    mr = jnp.real(measfft).astype(jnp.float32).reshape(B, CS, HW)
    mi = jnp.imag(measfft).astype(jnp.float32).reshape(B, CS, HW)

    dr_r, dr_i = wiener_apply(mr, mi, fr, fi)
    DR = (dr_r + 1j * dr_i).reshape(B, C, S, H, W)

    deconvolvedr = jnp.real(jnp.fft.ifft2(DR))
    deconvolved = jnp.fft.ifftshift(deconvolvedr, axes=(-2, -1)).astype(jnp.float32)

    # Lane-dense per-(b,c) normalization (two tiled Pallas passes).
    out = normalize(deconvolved.reshape(B * C, S, HW))
    return out.reshape(B, C, S, H, W)


# Pure-JAX reference (mirrors the PyTorch forward op-for-op) for self-check.
def wiener_net_reference(meas, psf, reg_filter, lambd):
    B, C, S, H, W = meas.shape
    ph, pw = psf.shape[-2:]
    pad_h = (H - ph) // 2
    pad_w = (W - pw) // 2
    if pw % 2 == 1:
        psf_padded = jnp.pad(
            psf, ((0, 0), (0, 0), (0, 0), (pad_h + 1, pad_h), (pad_w + 1, pad_w)))
    else:
        psf_padded = jnp.pad(
            psf, ((0, 0), (0, 0), (0, 0), (pad_h, pad_h), (pad_w, pad_w)))
    Hpad, Wpad = psf_padded.shape[-2:]
    left = (Hpad - 3) // 2
    top = (Wpad - 3) // 2
    reg_padded = jnp.pad(
        reg_filter, ((0, 0), (0, 0), (0, 0), (left + 1, left), (top + 1, top)))
    regfft = jnp.fft.fft2(jnp.fft.fftshift(reg_padded, axes=(-2, -1)))
    Hr = jnp.fft.fft2(psf_padded[0][None])
    invFiltr = jnp.conj(Hr) / (jnp.abs(Hr) ** 2
                               + lambd ** 2 * jnp.abs(regfft) ** 2 + 1e-6)
    DR = jnp.fft.fft2(meas) * invFiltr
    deconvolved = jnp.fft.ifftshift(jnp.real(jnp.fft.ifft2(DR)), axes=(-2, -1))
    dmax = deconvolved.reshape(B, C, -1).max(axis=2)[:, :, None, None, None]
    return (deconvolved / dmax).astype(jnp.float32)


if __name__ == "__main__":
    B, C, S, H, W = 2, 1, 4, 16, 16     # batch, channels, psf stack, spatial
    ph, pw = 8, 8                       # psf spatial size (even branch)

    key = jax.random.PRNGKey(0)
    k_meas, k_psf = jax.random.split(key)
    meas = jax.random.normal(k_meas, (B, C, S, H, W), dtype=jnp.float32)
    psf = jax.random.uniform(k_psf, (1, C, S, ph, pw), dtype=jnp.float32)
    psf = psf / jnp.sum(psf, axis=(-2, -1), keepdims=True)

    # Parameters as in WienerNet.__init__ (deterministic, no checkpoint)
    impulse = jnp.array([[0., 0., 0.], [0., 1., 0.], [0., 0., 0.]], jnp.float32)
    reg_filter = jnp.broadcast_to(impulse, (S, 3, 3))[None, None]   # [1,1,S,3,3]
    lambd = jnp.ones((1, 1, S, 1, 1), dtype=jnp.float32)            # [1,1,S,1,1]

    out = wiener_net_forward(meas, psf, reg_filter, lambd)
    out = jax.block_until_ready(out)

    ref = wiener_net_reference(meas, psf, reg_filter, lambd)
    assert out.shape == (B, C, S, H, W), out.shape
    assert jnp.allclose(out, ref, rtol=1e-4, atol=1e-5), "mismatch vs reference"
    print("KERNEL_OK")
</pallas_src>

<mosaic_0001>
module attributes {stable_mosaic.version = 11 : i64} {
  func.func @_wiener_filter_kernel(%arg0: i32, %arg1: i32, %arg2: memref<1x4x256xf32, #tpu.memory_space<vmem>>, %arg3: memref<1x4x256xf32, #tpu.memory_space<vmem>>, %arg4: memref<4x256xf32, #tpu.memory_space<vmem>>, %arg5: memref<4x1xf32, #tpu.memory_space<vmem>>, %arg6: memref<1x4x256xf32, #tpu.memory_space<vmem>>, %arg7: memref<1x4x256xf32, #tpu.memory_space<vmem>>) attributes {dimension_semantics = [#tpu.dimension_semantics<parallel>, #tpu.dimension_semantics<parallel>], iteration_bounds = array<i64: 1, 1>, scalar_prefetch = 0 : i64, scratch_operands = 0 : i64, tpu.core_type = #tpu.core_type<tc>, window_params = [{transform_indices = @transform_0, window_bounds = array<i64: 1, 4, 256>}, {transform_indices = @transform_1, window_bounds = array<i64: 1, 4, 256>}, {transform_indices = @transform_2, window_bounds = array<i64: 4, 256>}, {pipeline_mode = #tpu.pipeline_mode<synchronous>, transform_indices = @transform_3, window_bounds = array<i64: 4, 1>}, {transform_indices = @transform_4, window_bounds = array<i64: 1, 4, 256>}, {transform_indices = @transform_5, window_bounds = array<i64: 1, 4, 256>}]} {
    %c0 = arith.constant 0 : index
    %c0_0 = arith.constant 0 : index
    %c0_1 = arith.constant 0 : index
    %0 = vector.load %arg2[%c0, %c0_0, %c0_1] : memref<1x4x256xf32, #tpu.memory_space<vmem>>, vector<1x4x256xf32>
    %c0_2 = arith.constant 0 : index
    %c0_3 = arith.constant 0 : index
    %c0_4 = arith.constant 0 : index
    %1 = vector.load %arg3[%c0_2, %c0_3, %c0_4] : memref<1x4x256xf32, #tpu.memory_space<vmem>>, vector<1x4x256xf32>
    %c0_5 = arith.constant 0 : index
    %c0_6 = arith.constant 0 : index
    %2 = vector.load %arg5[%c0_5, %c0_6] : memref<4x1xf32, #tpu.memory_space<vmem>>, vector<4x1xf32>
    %3 = arith.mulf %0, %0 : vector<1x4x256xf32>
    %4 = arith.mulf %1, %1 : vector<1x4x256xf32>
    %5 = arith.addf %3, %4 : vector<1x4x256xf32>
    %6 = arith.mulf %2, %2 : vector<4x1xf32>
    %c0_7 = arith.constant 0 : index
    %c0_8 = arith.constant 0 : index
    %7 = vector.load %arg4[%c0_7, %c0_8] : memref<4x256xf32, #tpu.memory_space<vmem>>, vector<4x256xf32>
    %8 = vector.broadcast %6 : vector<4x1xf32> to vector<4x256xf32>
    %9 = arith.mulf %8, %7 : vector<4x256xf32>
    %10 = vector.shape_cast %9 : vector<4x256xf32> to vector<1x4x256xf32>
    %11 = arith.addf %5, %10 : vector<1x4x256xf32>
    %cst = arith.constant 9.99999997E-7 : f32
    %12 = vector.broadcast %cst : f32 to vector<1x4x256xf32>
    %13 = arith.addf %11, %12 : vector<1x4x256xf32>
    %14 = tpu.reciprocal %13 : vector<1x4x256xf32> -> vector<1x4x256xf32>
    %15 = arith.mulf %0, %14 : vector<1x4x256xf32>
    %c0_9 = arith.constant 0 : index
    %c0_10 = arith.constant 0 : index
    %c0_11 = arith.constant 0 : index
    %16 = vector.load %arg6[%c0_9, %c0_10, %c0_11] : memref<1x4x256xf32, #tpu.memory_space<vmem>>, vector<1x4x256xf32>
    tpu.vector_store %arg6[%c0_9, %c0_10, %c0_11], %15 {strides = array<i32>} : memref<1x4x256xf32, #tpu.memory_space<vmem>>, vector<1x4x256xf32>,
    %17 = arith.mulf %1, %14 : vector<1x4x256xf32>
    %c0_12 = arith.constant 0 : index
    %c0_13 = arith.constant 0 : index
    %c0_14 = arith.constant 0 : index
    %18 = vector.load %arg7[%c0_12, %c0_13, %c0_14] : memref<1x4x256xf32, #tpu.memory_space<vmem>>, vector<1x4x256xf32>
    tpu.vector_store %arg7[%c0_12, %c0_13, %c0_14], %17 {strides = array<i32>} : memref<1x4x256xf32, #tpu.memory_space<vmem>>, vector<1x4x256xf32>,
    return
  }
  func.func @transform_0(%arg0: i32, %arg1: i32) -> (i32, i32, i32) {
    %c0_i32 = arith.constant 0 : i32
    %c0_i32_0 = arith.constant 0 : i32
    return %arg0, %c0_i32, %arg1 : i32, i32, i32
  }
  func.func @transform_1(%arg0: i32, %arg1: i32) -> (i32, i32, i32) {
    %c0_i32 = arith.constant 0 : i32
    %c0_i32_0 = arith.constant 0 : i32
    return %arg0, %c0_i32, %arg1 : i32, i32, i32
  }
  func.func @transform_2(%arg0: i32, %arg1: i32) -> (i32, i32) {
    %c0_i32 = arith.constant 0 : i32
    %c0_i32_0 = arith.constant 0 : i32
    return %c0_i32, %arg1 : i32, i32
  }
  func.func @transform_3(%arg0: i32, %arg1: i32) -> (i32, i32) {
    %c0_i32 = arith.constant 0 : i32
    %c0_i32_0 = arith.constant 0 : i32
    %c0_i32_1 = arith.constant 0 : i32
    return %c0_i32, %c0_i32_0 : i32, i32
  }
  func.func @transform_4(%arg0: i32, %arg1: i32) -> (i32, i32, i32) {
    %c0_i32 = arith.constant 0 : i32
    %c0_i32_0 = arith.constant 0 : i32
    return %arg0, %c0_i32, %arg1 : i32, i32, i32
  }
  func.func @transform_5(%arg0: i32, %arg1: i32) -> (i32, i32, i32) {
    %c0_i32 = arith.constant 0 : i32
    %c0_i32_0 = arith.constant 0 : i32
    return %arg0, %c0_i32, %arg1 : i32, i32, i32
  }
}

</mosaic_0001>

<bundles_post_ra>
// kernel: tpu_custom_call.1
= control target key start
LH: loop header
LB: loop body
LE: loop exit
PB: predicated region body
PF: predicated region fallthrough
CT: control target
= control target key end

     0   :  { %11 = vsyncpa [#allocation3], 0  ;;  %s298_s0 = inlined_call_operand.hbm [shape: f32[1,4,256], index: 0, kind: input, shape index: {}]   ;;  %s299_s1 = inlined_call_operand.vmem [shape: f32[1,4,256], index: 1, kind: input, shape index: {}]   ;;  %s300_s2 = inlined_call_operand.hbm [shape: f32[4,256], index: 2, kind: input, shape index: {}]   ;;  %s301_s3 = inlined_call_operand.vmem [shape: f32[4,1], index: 3, kind: input, shape index: {}]   ;;  %s302_s4 = inlined_call_operand.hbm [shape: f32[1,4,256], index: 4, kind: output, shape index: {0}]   ;;  %s303_s5 = inlined_call_operand.hbm [shape: f32[1,4,256], index: 5, kind: output, shape index: {1}]  }
   0x1   :  { %12 = vsyncpa [#allocation6], 0 }
   0x2   :  { %13 = vsyncpa [#allocation4], 0 }
   0x3   :  { %14 = vsyncpa [#allocation9], 0  ;;  %s209_s18 = smov [#allocation2]   ;;  %s210_s20 = smov [#allocation5]  }
   0x4   :  { %s21_s19 = sshll.u32 %s209_s18, 4  ;;  %s33_s21 = sshll.u32 %s210_s20, 4  ;;  %s22_s19 = int_to_ptr.vmem [resolvable:$true] %s21_s19  ;;  %s34_s21 = int_to_ptr.vmem [resolvable:$true] %s33_s21 }
   0x5   :  { %s113_s24 = scalar_lea.hbm %s298_s0, 128 }
   0x6   :  { %p114_p0 = scmp.ne.s32.totalorder %s298_s0, %s113_s24  ;;  %p117_p1 = scmp.lt.u32.totalorder %s113_s24, %s298_s0 }
   0x8   :  { %p119_p2 = pnand %p117_p1, %p114_p0 }
   0xa   :  { %122 = shalt.err (!%p119_p2)
}
   0xb   :  { %s123_s29 = scalar_lea.vmem %s22_s19, 128  ;;  %p128_p4 = scmp.lt.s32.totalorder %s22_s19, %s22_s19 }
   0xc   :  { %p124_p3 = scmp.ne.s32.totalorder %s22_s19, %s123_s29  ;;  %p129_p5 = scmp.lt.s32.totalorder %s123_s29, %s123_s29 }
   0xe   :  { %p130_p6 = por %p129_p5, %p128_p4 }
  0x10   :  { %p131_p7 = pnand %p130_p6, %p124_p3 }
  0x12   :  { %134 = shalt.err (!%p131_p7)
}
  0x13   :  { %24 = dma.hbm_to_vmem [thread:$0]  %s298_s0, 128, %s22_s19, [#allocation3]  }
  0x14   :  { %s135_s9 = scalar_lea.hbm %s300_s2, 128 }
  0x15   :  { %p136_p8 = scmp.ne.s32.totalorder %s300_s2, %s135_s9  ;;  %p139_p9 = scmp.lt.u32.totalorder %s135_s9, %s300_s2 }
  0x17   :  { %p141_p10 = pnand %p139_p9, %p136_p8 }
  0x19   :  { %144 = shalt.err (!%p141_p10)
}
  0x1a   :  { %s145_s14 = scalar_lea.vmem %s34_s21, 128  ;;  %p150_p12 = scmp.lt.s32.totalorder %s34_s21, %s34_s21 }
  0x1b   :  { %p146_p11 = scmp.ne.s32.totalorder %s34_s21, %s145_s14  ;;  %p151_p13 = scmp.lt.s32.totalorder %s145_s14, %s145_s14 }
  0x1d   :  { %p152_p0 = por %p151_p13, %p150_p12 }
  0x1f   :  { %p153_p1 = pnand %p152_p0, %p146_p11 }
  0x21   :  { %156 = shalt.err (!%p153_p1)
}
  0x22   :  { %36 = dma.hbm_to_vmem [thread:$0]  %s300_s2, 128, %s34_s21, [#allocation6]  }
  0x23   :  { %201 = dma.done.wait [#allocation3], 128  }
  0x24   :  { %202 = vsyncadd [#allocation3], 4294967168 }
  0x25   :  { %203 = dma.done.wait [#allocation6], 128  }
  0x26   :  { %204 = vsyncadd [#allocation6], 4294967168  ;;  %v211_v0 = vmov 0   ;;  %v47_v1 = vld [vmem:[%s301_s3] sm:$0xf]  ;;  %v52_v3 = vld [vmem:[#allocation5] sm:$0xff] }
  0x27   :  { %109 = vset.pattern.permute.xlu0 %v211_v0  ;;  %v51_v2 = vmul.f32 %v47_v1, %v47_v1  ;;  %v45_v4 = vld [vmem:[#allocation2] sm:$0xff]  ;;  %v59_v6 = vcombine.high %v52_v3, %v52_v3  ;;  %s212_s2 = smov [#allocation7]   ;;  %s213_s20 = smov [#allocation8]  }
  0x28   :  { %v46_v5 = vld [vmem:[%s299_s1] sm:$0xff]  ;;  %v48_v7 = vmul.f32 %v45_v4, %v45_v4  ;;  %s80_s3 = sshll.u32 %s212_s2, 4  ;;  %s90_s21 = sshll.u32 %s213_s20, 4  ;;  %s81_s3 = int_to_ptr.vmem [resolvable:$true] %s80_s3  ;;  %s91_s21 = int_to_ptr.vmem [resolvable:$true] %s90_s21 }
  0x29   :  { %55 = vperm.xlu0 %109, %v51_v2   ;;  %v49_v8 = vmul.f32 %v46_v5, %v46_v5  ;;  %s157_s1 = scalar_lea.vmem %s81_s3, 128  ;;  %p162_p3 = scmp.lt.s32.totalorder %s81_s3, %s81_s3 }
  0x2a   :  { %p158_p2 = scmp.ne.s32.totalorder %s81_s3, %s157_s1  ;;  %p163_p4 = scmp.lt.s32.totalorder %s157_s1, %s157_s1 }
  0x2b   :  { %v50_v10 = vadd.f32 %v49_v8, %v48_v7 }
  0x2c   :  { %p164_p5 = por %p163_p4, %p162_p3 }
  0x2e   :  { %p165_p6 = pnand %p164_p5, %p158_p2 }
  0xa8   :  { %v56_v9 = vpop.permute.xlu0 %55 }
  0xa9   :  { %v61_v11 = vmul.f32 %v56_v9, %v52_v3  ;;  %v62_v12 = vmul.f32 %v59_v6, %v56_v9 }
  0xab   :  { %v65_v13 = vcombine.low %v61_v11, %v62_v12 }
  0xad   :  { %v67_v14 = vadd.f32 %v65_v13, %v50_v10 }
  0xaf   :  { %v68_v15 = vadd.f32 1e-06, %v67_v14 }
  0xb1   :  { %111 = vrcp.f32 %v68_v15 }
  0xbb   :  { %v112_v16 = vpop.eup %111 }
  0xbc   :  { %v70_v17 = vmul.f32 %v112_v16, %v45_v4  ;;  %v72_v18 = vmul.f32 %v112_v16, %v46_v5 }
  0xbe   :  { %71 = vst [vmem:[#allocation7] sm:$0xff] %v70_v17  ;;  %73 = vst [vmem:[#allocation8] sm:$0xff] %v72_v18 }
  0xbf   :  { %168 = shalt.err (!%p165_p6)
}
  0xc0   :  { %s169_s24 = scalar_lea.hbm %s302_s4, 128 }
  0xc1   :  { %p170_p7 = scmp.ne.s32.totalorder %s302_s4, %s169_s24  ;;  %p173_p8 = scmp.lt.u32.totalorder %s169_s24, %s302_s4 }
  0xc3   :  { %p175_p9 = pnand %p173_p8, %p170_p7 }
  0xc5   :  { %178 = shalt.err (!%p175_p9)
}
  0xc6   :  { %83 = dma.vmem_to_hbm [thread:$0]  %s81_s3, 128, %s302_s4, [#allocation4]  }
  0xc7   :  { %s179_s6 = scalar_lea.vmem %s91_s21, 128  ;;  %p184_p11 = scmp.lt.s32.totalorder %s91_s21, %s91_s21 }
  0xc8   :  { %p180_p10 = scmp.ne.s32.totalorder %s91_s21, %s179_s6  ;;  %p185_p12 = scmp.lt.s32.totalorder %s179_s6, %s179_s6 }
  0xca   :  { %p186_p13 = por %p185_p12, %p184_p11 }
  0xcc   :  { %p187_p0 = pnand %p186_p13, %p180_p10 }
  0xce   :  { %190 = shalt.err (!%p187_p0)
}
  0xcf   :  { %s191_s9 = scalar_lea.hbm %s303_s5, 128 }
  0xd0   :  { %p192_p1 = scmp.ne.s32.totalorder %s303_s5, %s191_s9  ;;  %p195_p2 = scmp.lt.u32.totalorder %s191_s9, %s303_s5 }
  0xd2   :  { %p197_p3 = pnand %p195_p2, %p192_p1 }
  0xd4   :  { %200 = shalt.err (!%p197_p3)
}
  0xd5   :  { %93 = dma.vmem_to_hbm [thread:$0]  %s91_s21, 128, %s303_s5, [#allocation9]  }
  0xd6   :  { %205 = dma.done.wait [#allocation4], 128  }
  0xd7   :  { %206 = vsyncadd [#allocation4], 4294967168 }
  0xd8   :  { %207 = dma.done.wait [#allocation9], 128  }
  0xd9   :  { %208 = vsyncadd [#allocation9], 4294967168 }
  0xda   :  { %100 = vsyncpa [#allocation3], 1 }
  0xdb   :  { %101 = vsyncpa [#allocation6], 1 }
  0xdc   :  { %102 = vsyncpa [#allocation4], 1 }
  0xdd   :  { %103 = vsyncpa [#allocation9], 1 }

</bundles_post_ra>
